<compile_context>
chip_gen: v6e
topology: v6e:2x2x1
jax: 0.10.0
libtpu: 0.0.40
codegen_flags: <defaults>
</compile_context>

<pallas_src>
import jax
import jax.numpy as jnp
from jax import lax
from jax.experimental import pallas as pl
from jax.experimental.pallas import tpu as pltpu


def _relu_kernel(x_ref, o_ref):
    """Elementwise ReLU on a lane-dense (tile_rows, H*W) block."""
    o_ref[...] = jnp.maximum(x_ref[...], 0).astype(o_ref.dtype)


def _pick_row_tile(rows, cols, itemsize, budget_bytes=4 << 20):
    """Largest row tile that divides `rows`, is a multiple of 8 (sublane),
    and keeps one block under `budget_bytes`."""
    max_rows = max(8, (budget_bytes // max(1, cols * itemsize)) // 8 * 8)
    tile = min(rows, max_rows)
    tile -= tile % 8
    tile = max(tile, 8)
    while rows % tile != 0:
        tile -= 8
    return tile


@jax.jit
def ode_function1_forward(t, x_nchw):
    """Forward pass of OdeFunction1: returns ReLU(x).

    `t` is accepted for signature parity with the PyTorch module but does not
    influence the returned value (the ConcatConv2d output is discarded in the
    reference forward, as is the BatchNorm output).
    """
    del t  # dead w.r.t. the returned value
    B, C, H, W = x_nchw.shape
    rows, cols = B * C, H * W
    x2d = x_nchw.reshape(rows, cols)          # lane-dense: last dim = H*W

    if rows % 8 == 0 and cols % 128 == 0:
        tile_r = _pick_row_tile(rows, cols, x2d.dtype.itemsize)
        grid = (rows // tile_r,)
        in_spec = pl.BlockSpec((tile_r, cols), lambda i: (i, 0))
        out_spec = pl.BlockSpec((tile_r, cols), lambda i: (i, 0))
    else:
        # Fallback: a single whole-array block is always layout-legal.
        grid = (1,)
        in_spec = pl.BlockSpec((rows, cols), lambda i: (0, 0))
        out_spec = pl.BlockSpec((rows, cols), lambda i: (0, 0))

    out2d = pl.pallas_call(
        _relu_kernel,
        out_shape=jax.ShapeDtypeStruct((rows, cols), x2d.dtype),
        grid=grid,
        in_specs=[in_spec],
        out_specs=out_spec,
        compiler_params=pltpu.CompilerParams(
            dimension_semantics=("parallel",)),
    )(x2d)

    return out2d.reshape(B, C, H, W)


# ------------------- plain-JAX mirror of the literal PyTorch forward -------------------
def ode_function1_ref(t, x, conv_w_hwio, conv_b, gamma, beta, mean, var,
                      eps=1e-5):
    """Mirrors the PyTorch forward line by line, including the discarded ops."""
    # ConcatConv2d: concat a t-filled channel, 3x3 conv, pad=1.  (result discarded)
    tt = jnp.ones_like(x[:, :1, :, :]) * t
    ttx = jnp.concatenate([tt, x], axis=1)                         # (B, C+1, H, W)
    ttx_nhwc = jnp.transpose(ttx, (0, 2, 3, 1))
    out = lax.conv_general_dilated(
        ttx_nhwc, conv_w_hwio, window_strides=(1, 1), padding="SAME",
        dimension_numbers=("NHWC", "HWIO", "NHWC")) + conv_b       # discarded
    # BatchNorm2d(x), eval-mode.  (result discarded)
    out = ((x - mean[None, :, None, None])
           / jnp.sqrt(var[None, :, None, None] + eps)
           * gamma[None, :, None, None] + beta[None, :, None, None])
    # ReLU(x) -- the actual return value of the module.
    out = jnp.maximum(x, 0.0)
    return out


if __name__ == "__main__":
    B, C, H, W = 2, 4, 16, 16
    key = jax.random.PRNGKey(0)
    k_x, k_w, k_b, k_g, k_be, k_m, k_v = jax.random.split(key, 7)

    x = jax.random.normal(k_x, (B, C, H, W), jnp.float32)
    t = jnp.float32(0.5)

    # Parameters of the (dead) ConcatConv2d / BatchNorm2d branches, built only
    # so the reference can mirror the literal PyTorch forward.
    w_oihw = 0.1 * jax.random.normal(k_w, (C, C + 1, 3, 3), jnp.float32)
    w_hwio = jnp.transpose(w_oihw, (2, 3, 1, 0))
    conv_b = 0.1 * jax.random.normal(k_b, (C,), jnp.float32)
    gamma = 1.0 + 0.1 * jax.random.normal(k_g, (C,), jnp.float32)
    beta = 0.1 * jax.random.normal(k_be, (C,), jnp.float32)
    mean = 0.1 * jax.random.normal(k_m, (C,), jnp.float32)
    var = jnp.abs(jax.random.normal(k_v, (C,), jnp.float32)) + 0.5

    out = ode_function1_forward(t, x)
    out = jax.block_until_ready(out)

    ref = ode_function1_ref(t, x, w_hwio, conv_b, gamma, beta, mean, var)
    assert out.shape == (B, C, H, W)
    assert jnp.allclose(out, ref, atol=1e-6, rtol=1e-6), "mismatch vs reference"

    print("KERNEL_OK")
</pallas_src>

<mosaic_0001>
module attributes {stable_mosaic.version = 11 : i64} {
  func.func @_relu_kernel(%arg0: i32, %arg1: memref<8x256xf32, #tpu.memory_space<vmem>>, %arg2: memref<8x256xf32, #tpu.memory_space<vmem>>) attributes {dimension_semantics = [#tpu.dimension_semantics<parallel>], iteration_bounds = array<i64: 1>, scalar_prefetch = 0 : i64, scratch_operands = 0 : i64, tpu.core_type = #tpu.core_type<tc>, window_params = [{transform_indices = @transform_0, window_bounds = array<i64: 8, 256>}, {transform_indices = @transform_1, window_bounds = array<i64: 8, 256>}]} {
    %c0 = arith.constant 0 : index
    %c0_0 = arith.constant 0 : index
    %0 = vector.load %arg1[%c0, %c0_0] : memref<8x256xf32, #tpu.memory_space<vmem>>, vector<8x256xf32>
    %cst = arith.constant 0.000000e+00 : f32
    %1 = vector.broadcast %cst : f32 to vector<8x256xf32>
    %2 = arith.maximumf %0, %1 : vector<8x256xf32>
    %c0_1 = arith.constant 0 : index
    %c0_2 = arith.constant 0 : index
    %3 = vector.load %arg2[%c0_1, %c0_2] : memref<8x256xf32, #tpu.memory_space<vmem>>, vector<8x256xf32>
    tpu.vector_store %arg2[%c0_1, %c0_2], %2 {strides = array<i32>} : memref<8x256xf32, #tpu.memory_space<vmem>>, vector<8x256xf32>,
    return
  }
  func.func @transform_0(%arg0: i32) -> (i32, i32) {
    %c0_i32 = arith.constant 0 : i32
    %c0_i32_0 = arith.constant 0 : i32
    return %arg0, %c0_i32 : i32, i32
  }
  func.func @transform_1(%arg0: i32) -> (i32, i32) {
    %c0_i32 = arith.constant 0 : i32
    %c0_i32_0 = arith.constant 0 : i32
    return %arg0, %c0_i32 : i32, i32
  }
}

</mosaic_0001>

<bundles_post_ra>
// kernel: ode_function1_forward.1
= control target key start
LH: loop header
LB: loop body
LE: loop exit
PB: predicated region body
PF: predicated region fallthrough
CT: control target
= control target key end

     0   :  { %s40_s0 = inlined_call_operand.vmem [shape: f32[8,256], index: 0, kind: input, shape index: {}]   ;;  %s41_s1 = inlined_call_operand.vmem [shape: f32[8,256], index: 1, kind: output, shape index: {}]  }
   0x1   :  { %v8_v0 = vld [vmem:[%s40_s0] sm:$0xff]  ;;  %v9_v1 = vld [vmem:[%s40_s0 + $0x8] sm:$0xff] }
   0x2   :  { %v10_v2 = vmax.f32 %v8_v0, 0.0  ;;  %v11_v3 = vmax.f32 %v9_v1, 0.0 }
   0x4   :  { %12 = vst [vmem:[%s41_s1] sm:$0xff] %v10_v2  ;;  %13 = vst [vmem:[%s41_s1 + $0x8] sm:$0xff] %v11_v3 }

</bundles_post_ra>
